<compile_context>
chip_gen: v7x
topology: tpu7x:2x2x1
jax: 0.10.0
libtpu: 0.0.40
codegen_flags: <defaults>
</compile_context>

<pallas_src>
import functools
import math

import jax
import jax.numpy as jnp
from jax.experimental import pallas as pl
from jax.experimental.pallas import tpu as pltpu


# --------------------------------------------------------------------------- #
# Kernel
# --------------------------------------------------------------------------- #
def _output_manager_kernel(x_ref, w_ref, b_ref, o_ref):
    # x_ref : (2, tm, D)   both "a" halves of the current row tile
    # w_ref : (D, 2D)      fused [Wk * q | Wv / sqrt(D)]
    # b_ref : (1, 2D)      fused [bk * q | bv / sqrt(D)]   (always f32)
    # o_ref : (tm, D)
    a2, tm, d = x_ref.shape

    # Merge the two "a" halves into one M = 2*tm matmul (layout-free reshape:
    # tm is a multiple of 8, D a multiple of 128).  Single MXU push, f32 acc.
    x = x_ref[...].reshape(a2 * tm, d)
    kv = jnp.dot(x, w_ref[...], preferred_element_type=jnp.float32) + b_ref[...]

    # Row halves (sublane-aligned split at tm) and lane halves (split at D).
    qk0, v0 = kv[:tm, :d], kv[:tm, d:]     # q already folded into Wk / bk
    qk1, v1 = kv[tm:, :d], kv[tm:, d:]     # 1/sqrt(D) already folded into Wv / bv

    # 2-way softmax over the "a" axis == sigmoid of the logit difference:
    #   s0 = exp(qk0) / (exp(qk0)+exp(qk1)) = sigmoid(qk0 - qk1),  s1 = 1 - s0
    #   o  = s0*v0 + s1*v1 = v1 + s0*(v0 - v1)
    w0 = jax.nn.sigmoid(qk0 - qk1)
    o_ref[...] = (v1 + w0 * (v0 - v1)).astype(o_ref.dtype)


# --------------------------------------------------------------------------- #
# Tiling / VMEM heuristics
# --------------------------------------------------------------------------- #
def _cdiv(a, b):
    return -(-a // b)


def _round_up(n, m):
    return ((n + m - 1) // m) * m


def _vmem_capacity_bytes(default=64 << 20):
    try:
        return int(pltpu.get_tpu_info().vmem_capacity_bytes)
    except Exception:
        return default  # conservative (v7x per-TC value)


def _pick_tm(rows, d, *, x_bytes, w_bytes, o_bytes, single_buf_w,
             max_tm=512, vmem_budget=32 << 20):
    """Largest row tile (multiple of 8, <= max_tm) fitting the VMEM budget,
    then adjusted so the grid has >= 4 (preferably balanced) steps."""

    def vmem_need(t):
        wmul = 1 if single_buf_w else 2
        need = 2 * (2 * t * d) * x_bytes                    # x block, 2-buffered
        need += 2 * (t * d) * o_bytes                       # out block, 2-buffered
        need += wmul * ((d * 2 * d) * w_bytes + (2 * d) * 4)  # fused W + bias
        need += (2 * t) * (2 * d) * 4                       # f32 kv intermediate
        need += 3 * t * d * 4                               # sigmoid / diff / out
        return need

    tm = max(8, min(max_tm, _round_up(rows, 8)))
    tm -= tm % 8
    while tm > 8 and vmem_need(tm) > vmem_budget:
        tm = max(8, (tm // 2) - ((tm // 2) % 8))

    # Keep >= 4 grid steps when rows allow: v7x shards the parallel axis across
    # 2 TensorCores, and each core needs >= 2 blocks to overlap DMA and compute.
    if _cdiv(rows, tm) < 4 and rows >= 4 * 8:
        tm = max(8, _round_up(_cdiv(rows, 4), 8))

    # Prefer a tile that divides rows exactly (no masked tail writes).
    if rows % tm != 0:
        for t in range(tm, max(8, tm // 2) - 1, -8):
            if t > 0 and rows % t == 0:
                tm = t
                break
    return tm


# --------------------------------------------------------------------------- #
# Wrapper
# --------------------------------------------------------------------------- #
def fuse_params(w_kv, b_kv, q, *, d_model, matmul_dtype=jnp.bfloat16):
    """One-time constant folding (cache this per weight set):
         qk = q * (x @ Wk + bk)  ==  x @ (Wk * q) + (bk * q)
         post-softmax 1/sqrt(D) folded into Wv / bv."""
    d = d_model
    scale = 1.0 / math.sqrt(d_model)
    qf = q.reshape(d).astype(jnp.float32)
    w32 = w_kv.astype(jnp.float32)
    b32 = b_kv.astype(jnp.float32)
    w_fused = jnp.concatenate(
        [w32[:, :d] * qf[None, :], w32[:, d:] * scale], axis=1)       # (D, 2D)
    b_fused = jnp.concatenate(
        [b32[:d] * qf, b32[d:] * scale]).reshape(1, 2 * d)            # (1, 2D) f32
    if matmul_dtype is not None:
        w_fused = w_fused.astype(matmul_dtype)
    # bias stays f32: it is added to the f32-accumulated matmul result.
    return w_fused, b_fused


def output_manager_forward(x, w_kv=None, b_kv=None, q=None, *, d_model,
                           fused_params=None, matmul_dtype=jnp.bfloat16,
                           out_dtype=None, tm=None, single_buffer_weights=None):
    """x: (2*B, C, D) -> o: (B, C, D).  Matches output_manager.forward.

    matmul_dtype: dtype of the MXU operands (x and fused W).  bf16 by default
      (the kernel is HBM-bound at realistic D; accumulation and softmax stay
      f32).  Pass None / jnp.float32 for an exact f32 path.
      # TODO(synk): fp8 operand path for v7x (matmul_dtype=jnp.float8_e4m3fn)
      # is plumbed through but not validated here.
    out_dtype: output dtype (defaults to x.dtype); bf16 halves the write.
    fused_params: optional precomputed (w_fused, b_fused) from fuse_params().
    """
    two_b, c, d = x.shape
    assert d == d_model, "last dim of x must equal d_model"
    assert two_b % 2 == 0, "leading dim must be 2*B"
    assert d % 128 == 0, "d_model must be a multiple of 128 (TPU lane width)"
    b = two_b // 2
    rows = b * c

    if fused_params is None:
        fused_params = fuse_params(w_kv, b_kv, q, d_model=d_model,
                                   matmul_dtype=matmul_dtype)
    w_fused, b_fused = fused_params

    # (2*B, C, D) row-major -> pure reshape gives the two "a" halves as
    # (2, B*C, D) with no slice/copy.
    xr = x.reshape(2, rows, d)
    if matmul_dtype is not None and xr.dtype != matmul_dtype:
        xr = xr.astype(matmul_dtype)

    out_dtype = x.dtype if out_dtype is None else out_dtype
    x_bytes = jnp.dtype(xr.dtype).itemsize
    w_bytes = jnp.dtype(w_fused.dtype).itemsize
    o_bytes = jnp.dtype(out_dtype).itemsize

    # Generation-aware VMEM budgeting (v5e/v6e: 128 MiB, v7x: 64 MiB per TC).
    vmem_cap = _vmem_capacity_bytes()
    vmem_budget = min(vmem_cap // 2, 96 << 20)
    vmem_limit = max(24 << 20,
                     min(vmem_budget + (16 << 20), vmem_cap - (8 << 20)))

    # Single-buffer the (constant index_map) weight/bias when the duplicate
    # buffer would waste >= ~4 MiB of VMEM (large D).
    if single_buffer_weights is None:
        single_buffer_weights = (2 * d * 2 * d * w_bytes) >= (8 << 20)

    if tm is None:
        tm = _pick_tm(rows, d, x_bytes=x_bytes, w_bytes=w_bytes,
                      o_bytes=o_bytes, single_buf_w=single_buffer_weights,
                      vmem_budget=vmem_budget)

    # No padding / slicing in the wrapper: Pallas clips the ragged tail block
    # (OOB reads are padded garbage, OOB writes are dropped); the garbage rows
    # only ever feed a sigmoid, which cannot trap on TPU.
    grid = (_cdiv(rows, tm),)

    if single_buffer_weights:
        w_spec = pl.BlockSpec((d, 2 * d), lambda i: (0, 0),
                              pipeline_mode=pl.Buffered(1))
        b_spec = pl.BlockSpec((1, 2 * d), lambda i: (0, 0),
                              pipeline_mode=pl.Buffered(1))
    else:
        w_spec = pl.BlockSpec((d, 2 * d), lambda i: (0, 0))
        b_spec = pl.BlockSpec((1, 2 * d), lambda i: (0, 0))

    cost = pl.CostEstimate(
        flops=int(2 * (2 * rows) * d * (2 * d) + 8 * rows * d),
        transcendentals=int(rows * d),
        bytes_accessed=int(2 * rows * d * x_bytes + rows * d * o_bytes
                           + d * 2 * d * w_bytes + 2 * d * 4),
    )

    out = pl.pallas_call(
        _output_manager_kernel,
        out_shape=jax.ShapeDtypeStruct((rows, d), out_dtype),
        grid_spec=pltpu.PrefetchScalarGridSpec(
            num_scalar_prefetch=0,
            grid=grid,
            in_specs=[
                pl.BlockSpec((2, tm, d), lambda i: (0, i, 0)),   # both halves
                w_spec,                                          # fused W
                b_spec,                                          # fused bias
            ],
            out_specs=pl.BlockSpec((tm, d), lambda i: (i, 0)),
        ),
        compiler_params=pltpu.CompilerParams(
            dimension_semantics=("parallel",),
            vmem_limit_bytes=int(vmem_limit)),
        cost_estimate=cost,
    )(xr, w_fused, b_fused)

    return out.reshape(b, c, d)


# --------------------------------------------------------------------------- #
# Pure-JAX reference (mirrors the PyTorch forward exactly)
# --------------------------------------------------------------------------- #
def output_manager_reference(x, w_kv, b_kv, q, *, d_model):
    two_b, c, d = x.shape
    b = two_b // 2
    xr = x.reshape(2, b, c, d)
    kv = jnp.einsum('abcd,de->abce', xr, w_kv) + b_kv
    k, v = kv[..., :d], kv[..., d:]
    qk = q.reshape(1, 1, 1, d) * k
    w = jax.nn.softmax(qk, axis=0) * (1.0 / math.sqrt(d_model))
    return jnp.einsum('abcd,abcd->bcd', w, v)


# --------------------------------------------------------------------------- #
# Demo / self-test
# --------------------------------------------------------------------------- #
if __name__ == "__main__":
    d_model = 128     # D (lane-aligned)
    B = 2             # "b" in (a b); total leading dim = 2*B = 4
    C = 16            # sequence / inner dim  -> rows = B*C = 32, grid = 4

    key = jax.random.PRNGKey(0)
    kx, kw, kb, kq = jax.random.split(key, 4)

    x = jax.random.normal(kx, (2 * B, C, d_model), dtype=jnp.float32)

    # nn.Linear(d_model, 2*d_model) kept as x @ W with W:(D, 2D), bias (2D,).
    w_kv = (jax.random.normal(kw, (d_model, 2 * d_model), dtype=jnp.float32)
            * (1.0 / math.sqrt(d_model)))
    b_kv = jax.random.normal(kb, (2 * d_model,), dtype=jnp.float32) * 0.01

    # q parameter: normal(mean=0, std=0.02), shape (1,1,1,D) -> stored flat.
    q = jax.random.normal(kq, (d_model,), dtype=jnp.float32) * 0.02

    ref = output_manager_reference(x, w_kv, b_kv, q, d_model=d_model)

    # Exact f32 path (only op-reassociation differs from the reference).
    out_f32 = output_manager_forward(x, w_kv, b_kv, q, d_model=d_model,
                                     matmul_dtype=None)
    out_f32 = jax.block_until_ready(out_f32)
    assert out_f32.shape == (B, C, d_model)
    assert jnp.allclose(out_f32, ref, atol=1e-4, rtol=1e-4), "f32 mismatch vs ref"

    # Default reduced-precision I/O path: bf16 matmul operands (f32 accumulation,
    # f32 softmax math), bf16 output, fused weights precomputed once (cacheable).
    fused = fuse_params(w_kv, b_kv, q, d_model=d_model)      # bf16 fused W
    out_bf16 = output_manager_forward(x, d_model=d_model, fused_params=fused,
                                      out_dtype=jnp.bfloat16)
    out_bf16 = jax.block_until_ready(out_bf16)
    assert out_bf16.shape == (B, C, d_model)
    assert jnp.allclose(out_bf16.astype(jnp.float32), ref,
                        atol=5e-2, rtol=5e-2), "bf16 mismatch vs ref"

    print("KERNEL_OK")
</pallas_src>

<mosaic_0001>
module attributes {stable_mosaic.version = 11 : i64} {
  func.func @_output_manager_kernel(%arg0: i32, %arg1: memref<2x8x128xf32, #tpu.memory_space<vmem>>, %arg2: memref<128x256xf32, #tpu.memory_space<vmem>>, %arg3: memref<1x256xf32, #tpu.memory_space<vmem>>, %arg4: memref<8x128xf32, #tpu.memory_space<vmem>>) attributes {dimension_semantics = [#tpu.dimension_semantics<parallel>], iteration_bounds = array<i64: 4>, scalar_prefetch = 0 : i64, scratch_operands = 0 : i64, tpu.core_type = #tpu.core_type<tc>, window_params = [{transform_indices = @transform_0, window_bounds = array<i64: 2, 8, 128>}, {pipeline_mode = #tpu.pipeline_mode<synchronous>, transform_indices = @transform_1, window_bounds = array<i64: 128, 256>}, {pipeline_mode = #tpu.pipeline_mode<synchronous>, transform_indices = @transform_2, window_bounds = array<i64: 1, 256>}, {transform_indices = @transform_3, window_bounds = array<i64: 8, 128>}]} {
    %c0 = arith.constant 0 : index
    %c0_0 = arith.constant 0 : index
    %c0_1 = arith.constant 0 : index
    %0 = vector.load %arg1[%c0, %c0_0, %c0_1] : memref<2x8x128xf32, #tpu.memory_space<vmem>>, vector<2x8x128xf32>
    %1 = vector.shape_cast %0 : vector<2x8x128xf32> to vector<16x128xf32>
    %c0_2 = arith.constant 0 : index
    %c0_3 = arith.constant 0 : index
    %2 = vector.load %arg2[%c0_2, %c0_3] : memref<128x256xf32, #tpu.memory_space<vmem>>, vector<128x256xf32>
    %cst = arith.constant dense<0.000000e+00> : vector<16x256xf32>
    %3 = tpu.matmul %1, %2, %cst {dimension_numbers = #tpu.dot_dimension_numbers<[1], [0], [0], [1], [0, 0, 1, 1], [], []>} : vector<16x128xf32>, vector<128x256xf32>, vector<16x256xf32> -> vector<16x256xf32>
    %c0_4 = arith.constant 0 : index
    %c0_5 = arith.constant 0 : index
    %4 = vector.load %arg3[%c0_4, %c0_5] : memref<1x256xf32, #tpu.memory_space<vmem>>, vector<1x256xf32>
    %5 = vector.broadcast %4 : vector<1x256xf32> to vector<16x256xf32>
    %6 = arith.addf %3, %5 : vector<16x256xf32>
    %7 = vector.extract_strided_slice %6 {offsets = [0, 0], sizes = [8, 128], strides = [1, 1]} : vector<16x256xf32> to vector<8x128xf32>
    %8 = vector.extract_strided_slice %6 {offsets = [0, 128], sizes = [8, 128], strides = [1, 1]} : vector<16x256xf32> to vector<8x128xf32>
    %9 = vector.extract_strided_slice %6 {offsets = [8, 0], sizes = [8, 128], strides = [1, 1]} : vector<16x256xf32> to vector<8x128xf32>
    %10 = vector.extract_strided_slice %6 {offsets = [8, 128], sizes = [8, 128], strides = [1, 1]} : vector<16x256xf32> to vector<8x128xf32>
    %11 = arith.subf %7, %9 : vector<8x128xf32>
    %12 = arith.negf %11 : vector<8x128xf32>
    %13 = math.exp %12 : vector<8x128xf32>
    %cst_6 = arith.constant 1.000000e+00 : f32
    %14 = vector.broadcast %cst_6 : f32 to vector<8x128xf32>
    %15 = arith.addf %14, %13 : vector<8x128xf32>
    %16 = arith.divf %14, %15 : vector<8x128xf32>
    %17 = arith.subf %8, %10 : vector<8x128xf32>
    %18 = arith.mulf %16, %17 : vector<8x128xf32>
    %19 = arith.addf %10, %18 : vector<8x128xf32>
    %c0_7 = arith.constant 0 : index
    %c0_8 = arith.constant 0 : index
    %20 = vector.load %arg4[%c0_7, %c0_8] : memref<8x128xf32, #tpu.memory_space<vmem>>, vector<8x128xf32>
    tpu.vector_store %arg4[%c0_7, %c0_8], %19 {strides = array<i32>} : memref<8x128xf32, #tpu.memory_space<vmem>>, vector<8x128xf32>,
    return
  }
  func.func @transform_0(%arg0: i32) -> (i32, i32, i32) {
    %c0_i32 = arith.constant 0 : i32
    %c0_i32_0 = arith.constant 0 : i32
    %c0_i32_1 = arith.constant 0 : i32
    return %c0_i32, %arg0, %c0_i32_0 : i32, i32, i32
  }
  func.func @transform_1(%arg0: i32) -> (i32, i32) {
    %c0_i32 = arith.constant 0 : i32
    %c0_i32_0 = arith.constant 0 : i32
    %c0_i32_1 = arith.constant 0 : i32
    return %c0_i32, %c0_i32_0 : i32, i32
  }
  func.func @transform_2(%arg0: i32) -> (i32, i32) {
    %c0_i32 = arith.constant 0 : i32
    %c0_i32_0 = arith.constant 0 : i32
    %c0_i32_1 = arith.constant 0 : i32
    return %c0_i32, %c0_i32_0 : i32, i32
  }
  func.func @transform_3(%arg0: i32) -> (i32, i32) {
    %c0_i32 = arith.constant 0 : i32
    %c0_i32_0 = arith.constant 0 : i32
    return %arg0, %c0_i32 : i32, i32
  }
}

</mosaic_0001>

<bundles_post_ra>
// kernel: tpu_custom_call.1
= control target key start
LH: loop header
LB: loop body
LE: loop exit
PB: predicated region body
PF: predicated region fallthrough
CT: control target
= control target key end

     0   :  { %8 = vsyncpa [#allocation3], 0  ;;  %s924_s0 = inlined_call_operand.hbm [shape: f32[2,32,128], index: 0, kind: input, shape index: {}]   ;;  %s925_s1 = inlined_call_operand.hbm [shape: f32[128,256], index: 1, kind: input, shape index: {}]   ;;  %s926_s2 = inlined_call_operand.vmem [shape: f32[1,256], index: 2, kind: input, shape index: {}]   ;;  %s927_s3 = inlined_call_operand.hbm [shape: f32[32,128], index: 3, kind: output, shape index: {}]  }
   0x1   :  { %10 = vsyncpa [#allocation3 + $0x1], 0 }
   0x2   :  { %11 = vsyncpa [#allocation6], 0 }
   0x3   :  { %12 = vsyncpa [#allocation4], 0 }
   0x4   :  { %14 = vsyncpa [#allocation4 + $0x1], 0  ;;  %s720_s12 = smov 0   ;;  %s722_s13 = smov 0  }
   0x5   :  { %s724_s14 = smov 0   ;;  %s726_s15 = smov 0  }
   0x6 LB: > { %s741_s16 = sadd.s32 4294967295, %s689_s15   ;;  %s431_s17 = sadd.s32 4294967294, %s689_s15   ;;  %s689_s15 = sphi %s726_s15, %s950_s15   ;;  %s685_s14 = sphi %s724_s14, %s949_s14   ;;  %s681_s13 = sphi %s722_s13, %s948_s13   ;;  %s677_s12 = sphi %s720_s12, %s947_s12  }
   0x7   : > { %s745_s18 = sadd.s32 1, %s689_s15   ;;  %s27_s19 = sadd.s32 1, %s685_s14 }
   0x8   : > { %s24_s20 = ssub.s32 %s689_s15, %s745_s18  ;;  %p34_p0 = scmp.ne.s32.totalorder %s685_s14, %s681_s13 }
   0x9   : > { %p25_p1 = scmp.eq.s32.totalorder %s24_s20, 0  ;;  %p35_p2 = scmp.eq.s32.totalorder %s689_s15, 0 }
   0xa   : > { %p40_p3 = scmp.ne.s32.totalorder %s681_s13, %s677_s12  ;;  %p928_p4 = scmp.eq.s32.totalorder %s741_s16, 0 }
   0xb   : > { %s757_s21 = scalar_select %p25_p1, %s685_s14, %s27_s19  }
   0xc   : > { %p759_p5 = por %p35_p2, %p34_p0  ;;  %p765_p6 = por %p928_p4, %p40_p3 }
   0xd   : > { %p106_p7 = scmp.eq.s32.totalorder %s741_s16, 3  ;;  %p112_p8 = scmp.eq.s32.totalorder %s431_s17, 3 }
   0xe   : > { %s932_s22 = scalar_select %p759_p5, 1, 0 }
   0xf   : > { %s933_s23 = scalar_select %p765_p6, 1, 0 }
  0x10   : > { %p432_p9 = scmp.ge.s32.totalorder %s689_s15, 1  ;;  %p119_p10 = scmp.lt.s32.totalorder %s689_s15, 5 }
  0x11   : > { %p772_p11 = por %p106_p7, %p34_p0  ;;  %p776_p12 = por %p112_p8, %p40_p3 }
  0x12   : > { %p780_p13 = pnand %p432_p9, %p119_p10  ;;  %s691_s27 = smov [#allocation5]  }
  0x13   : > { %s934_s24 = scalar_select %p772_p11, 1, 0 }
  0x14   : > { %s935_s25 = scalar_select %p776_p12, 1, 0 }
  0x15   : > { %s936_s26 = scalar_select %p780_p13, 1, 0 }
  0x16   : > { %p502_p1 = pneg %p780_p13  ;;  %s131_s28 = sshll.u32 %s691_s27, 4  ;;  %s132_s28 = int_to_ptr.vmem [resolvable:$true] %s131_s28 }
  0x17   : > { %s148_s30 = sand.u32 1, %s685_s14   ;;  %s561_s6 = scalar_lea.hbm %s925_s1, 4096 }
  0x18   : > { %p788_p2 = pnand %p502_p1, %p928_p4  ;;  %p562_p3 = scmp.ne.s32.totalorder %s925_s1, %s561_s6 }
  0x19   : > { %p568_p10 = scmp.lt.u32.totalorder %s561_s6, %s925_s1 }
  0x1a   : > { %p563_p7 = pneg %p788_p2 }
  0x1c   : > { %p564_p8 = pnand %p563_p7, %p562_p3 }
  0x1e   : > { %p565_p9 = pneg %p564_p8 }
  0x20   : > { %p570_p1 = pnand %p568_p10, %p565_p9 }
  0x22   : > { %573 = shalt.err (!%p570_p1)
}
  0x23   : > { %s574_s11 = scalar_lea.vmem %s132_s28, 4096  ;;  %p582_p11 = scmp.lt.s32.totalorder %s132_s28, %s132_s28 }
  0x24   : > { %p575_p4 = scmp.ne.s32.totalorder %s132_s28, %s574_s11  ;;  %p583_p6 = scmp.lt.s32.totalorder %s574_s11, %s574_s11 }
  0x26   : > { %p577_p0 = pnand %p575_p4, %p563_p7  ;;  %p584_p13 = por %p583_p6, %p582_p11 }
  0x28   : > { %p578_p12 = pneg %p577_p0 }
  0x2a   : > { %p585_p5 = pnand %p584_p13, %p578_p12 }
  0x2c   : > { %588 = shalt.err (!%p585_p5)
}
  0x2d   : > { %s692_s17 = smov 256   ;;  %s693_s19 = smov 16  }
  0x2e   : > { %505 = dma.hbm_to_vmem [thread:$0]  (!%p788_p2), %s925_s1, 4096, %s132_s28, [#allocation6], %s692_s17, %s692_s17, %s693_s19  }
  0x2f   : > { %p938_p3 = scmp.ne.s32.totalorder %s932_s22, 0  ;;  %p939_p8 = scmp.lt.s32.totalorder %s689_s15, 4 }
  0x30   : > { %s435_s5 = sshll.u32 %s148_s30, 4  ;;  %s436_s6 = sshll.u32 %s689_s15, 7 }
  0x31   : > { %p814_p4 = pnand %p939_p8, %p938_p3  ;;  %s822_s9 = scalar_lea.hbm %s924_s0, %s436_s6 }
  0x32   : > { %s152_s28 = scalar_lea.vmem [#allocation2], %s435_s5  ;;  %s826_s29 = scalar_lea.sflag [#allocation3], %s148_s30 }
  0x33   : > { %s158_s22 = sshll.u32 %s152_s28, 4  ;;  %s589_s10 = scalar_lea.hbm %s822_s9, 256  ;;  %s824_s22 = int_to_ptr.vmem [resolvable:$true] %s158_s22 }
  0x34   : > { %p590_p5 = scmp.ne.s32.totalorder %s822_s9, %s589_s10  ;;  %p591_p6 = pneg %p814_p4 }
  0x35   : > { %s594_s19 = scalar_lea.hbm %s924_s0, 1024  ;;  %p595_p13 = scmp.lt.u32.totalorder %s822_s9, %s924_s0 }
  0x36   : > { %p592_p11 = pnand %p591_p6, %p590_p5  ;;  %p596_p2 = scmp.lt.u32.totalorder %s594_s19, %s589_s10 }
  0x37   : > { %p598_p7 = scmp.lt.u32.totalorder %s589_s10, %s822_s9 }
  0x38   : > { %p593_p12 = pneg %p592_p11  ;;  %p597_p0 = por %p596_p2, %p595_p13 }
  0x3a   : > { %p599_p9 = por %p598_p7, %p597_p0 }
  0x3c   : > { %p600_p10 = pnand %p599_p9, %p593_p12 }
  0x3e   : > { %603 = shalt.err (!%p600_p10)
}
  0x3f   : > { %s604_s30 = scalar_lea.vmem %s824_s22, 256  ;;  %s694_s5 = smov [#allocation2]  }
  0x40   : > { %p605_p1 = scmp.ne.s32.totalorder %s824_s22, %s604_s30  ;;  %s609_s6 = sshll.u32 %s694_s5, 4  ;;  %s610_s6 = int_to_ptr.vmem [resolvable:$false] %s609_s6 }
  0x41   : > { %s611_s7 = scalar_lea.vmem %s610_s6, 512  ;;  %p612_p5 = scmp.lt.s32.totalorder %s824_s22, %s610_s6 }
  0x42   : > { %p607_p3 = pnand %p605_p1, %p591_p6  ;;  %p613_p11 = scmp.lt.s32.totalorder %s611_s7, %s604_s30 }
  0x44   : > { %p608_p8 = pneg %p607_p3  ;;  %p614_p13 = por %p613_p11, %p612_p5 }
  0x46   : > { %p615_p2 = pnand %p614_p13, %p608_p8 }
  0x48   : > { %618 = shalt.err (!%p615_p2)
}
  0x49   : > { %s695_s8 = smov 512   ;;  %s696_s28 = smov 128  }
  0x4a   : > { %s697_s10 = smov 8   ;;  %p941_p6 = scmp.ne.s32.totalorder %s936_s26, 0 }
  0x4b   : > { %509 = dma.hbm_to_vmem [thread:$0]  (!%p814_p4), %s822_s9, 256, %s824_s22, %s826_s29, %s695_s8, %s696_s28, %s697_s10  }
  0x4c   : > { %170 = sbr.rel (%p941_p6) target bundleno = 382 (0x17e), region = 32  ;;  %s857_s11 = sand.u32 (!%p941_p6), 1, %s681_s13  }
  0x4d   : > { %s438_s17 = sshll.u32 (!%p941_p6), %s857_s11, 4  ;;  %s173_s19 = scalar_lea.sflag (!%p941_p6), [#allocation3], %s857_s11 }
  0x4e   : > { %s861_s20 = scalar_lea.vmem (!%p941_p6), [#allocation2], %s438_s17  ;;  %p942_p12 = scmp.ne.s32.totalorder (!%p941_p6), %s933_s23, 0 }
  0x53   : > { %664 = dma.done.wait (%p942_p12), %s173_s19, 256  }
  0x54   : > { %666 = vsyncadd (%p942_p12), %s173_s19, 4294967040  ;;  %p943_p4 = scmp.eq.s32.totalorder %s741_s16, 0 }
  0x56   : > { %668 = dma.done.wait (%p943_p4), [#allocation6], 4096   ;;  %p944_p0 = pmov %p943_p4 }
  0x57   : > { %v698_v0 = vmov 0.0   ;;  %v206_v1 = vld [vmem:[#allocation5 + $0x8] sm:$0xff]  ;;  %v208_v2 = vld [vmem:[#allocation5 + $0x18] sm:$0xff]  ;;  %v205_v3 = vld [vmem:[#allocation5] sm:$0xff]  ;;  %v239_v51 = vlaneseq  ;;  %s440_s4 = sshll.u32 %s857_s11, 3  ;;  %s443_s9 = sshll.u32 %s741_s16, 7 }
  0x58   : > { %670 = vsyncadd (%p944_p0), [#allocation6], 4294963200  ;;  %313 = vmatprep.mubr.f32.mxu0 %v698_v0  ;;  %319 = vmatprep.mubr.f32.mxu1 %v698_v0  ;;  %v446_v4 = vpack.c.bf16 %v208_v2, %v206_v1  ;;  %v207_v5 = vld [vmem:[#allocation5 + $0x10] sm:$0xff]  ;;  %v210_v6 = vld [vmem:[#allocation5 + $0x28] sm:$0xff]  ;;  %s202_s22 = scalar_lea.vmem [#allocation7], %s440_s4  ;;  %s881_s5 = scalar_lea.hbm %s927_s3, %s443_s9 }
  0x59   : > { %v212_v7 = vld [vmem:[#allocation5 + $0x38] sm:$0xff]  ;;  %v448_v8 = vpack.c.bf16 %v207_v5, %v205_v3  ;;  %v209_v10 = vld [vmem:[#allocation5 + $0x20] sm:$0xff]  ;;  %v211_v11 = vld [vmem:[#allocation5 + $0x30] sm:$0xff]  ;;  %v240_v52 = vshrl.u32 %v239_v51, 7  ;;  %s351_s29 = sshll.u32 %s202_s22, 4  ;;  %s338_s6 = scalar_lea.sflag [#allocation4], %s857_s11  ;;  %s883_s29 = int_to_ptr.vmem [resolvable:$true] %s351_s29 }
  0x5a   : > { %v450_v9 = vpack.c.bf16 %v212_v7, %v210_v6  ;;  %v214_v12 = vld [vmem:[#allocation5 + $0x48] sm:$0xff]  ;;  %447 = vmatprep.subr.bf16.mxu0 %v446_v4  ;;  %478 = vmatprep.subr.bf16.mxu1 %v446_v4  ;;  %v216_v13 = vld [vmem:[#allocation5 + $0x58] sm:$0xff]  ;;  %v452_v14 = vpack.c.bf16 %v211_v11, %v209_v10  ;;  %v213_v16 = vld [vmem:[#allocation5 + $0x40] sm:$0xff]  ;;  %s619_s7 = scalar_lea.vmem %s883_s29, 128  ;;  %p945_p9 = scmp.ne.s32.totalorder %s934_s24, 0 }
  0x5b   : > { %449 = vmatpush1.bf16.msra.mxu0 %v448_v8  ;;  %486 = vmatpush1.bf16.msra.mxu1 %v448_v8  ;;  %v454_v15 = vpack.c.bf16 %v216_v13, %v214_v12  ;;  %v215_v17 = vld [vmem:[#allocation5 + $0x50] sm:$0xff]  ;;  %v218_v18 = vld [vmem:[#allocation5 + $0x68] sm:$0xff]  ;;  %v220_v19 = vld [vmem:[#allocation5 + $0x78] sm:$0xff]  ;;  %v241_v53 = vsub.s32 0, %v240_v52  ;;  %v245_v55 = vsub.s32 1, %v240_v52  ;;  %p620_p7 = scmp.ne.s32.totalorder %s883_s29, %s619_s7  ;;  %s699_s16 = smov [#allocation7]  }
  0x5c   : > { %451 = vmatprep.subr.bf16.mxu0 %v450_v9  ;;  %479 = vmatprep.subr.bf16.mxu1 %v450_v9  ;;  %v456_v20 = vpack.c.bf16 %v215_v17, %v213_v16  ;;  %v458_v21 = vpack.c.bf16 %v220_v19, %v218_v18  ;;  %v217_v22 = vld [vmem:[#allocation5 + $0x60] sm:$0xff]  ;;  %v219_v23 = vld [vmem:[#allocation5 + $0x70] sm:$0xff]  ;;  %v222_v24 = vld [vmem:[#allocation5 + $0x88] sm:$0xff]  ;;  %s623_s8 = sshll.u32 %s699_s16, 4  ;;  %s624_s8 = int_to_ptr.vmem [resolvable:$false] %s623_s8 }
  0x5d   : > { %v224_v25 = vld [vmem:[#allocation5 + $0x98] sm:$0xff]  ;;  %v460_v26 = vpack.c.bf16 %v219_v23, %v217_v22  ;;  %v221_v28 = vld [vmem:[#allocation5 + $0x80] sm:$0xff]  ;;  %v223_v29 = vld [vmem:[#allocation5 + $0x90] sm:$0xff]  ;;  %p621_p10 = pnand %p620_p7, %p945_p9  ;;  %s625_s28 = scalar_lea.vmem %s624_s8, 256 }
  0x5e   : > { %v462_v27 = vpack.c.bf16 %v224_v25, %v222_v24  ;;  %v226_v30 = vld [vmem:[#allocation5 + $0xa8] sm:$0xff]  ;;  %v228_v31 = vld [vmem:[#allocation5 + $0xb8] sm:$0xff]  ;;  %v464_v32 = vpack.c.bf16 %v223_v29, %v221_v28  ;;  %v225_v34 = vld [vmem:[#allocation5 + $0xa0] sm:$0xff]  ;;  %p626_p3 = scmp.lt.s32.totalorder %s883_s29, %s624_s8  ;;  %p627_p8 = scmp.lt.s32.totalorder %s625_s28, %s619_s7 }
  0x5f   : > { %453 = vmatpush1.bf16.msra.mxu0 %v452_v14  ;;  %487 = vmatpush1.bf16.msra.mxu1 %v452_v14  ;;  %v466_v33 = vpack.c.bf16 %v228_v31, %v226_v30  ;;  %v227_v35 = vld [vmem:[#allocation5 + $0xb0] sm:$0xff]  ;;  %v230_v36 = vld [vmem:[#allocation5 + $0xc8] sm:$0xff]  ;;  %v232_v37 = vld [vmem:[#allocation5 + $0xd8] sm:$0xff]  ;;  %p622_p1 = pneg %p621_p10 }
  0x60   : > { %455 = vmatprep.subr.bf16.mxu0 %v454_v15  ;;  %480 = vmatprep.subr.bf16.mxu1 %v454_v15  ;;  %v468_v38 = vpack.c.bf16 %v227_v35, %v225_v34  ;;  %v470_v39 = vpack.c.bf16 %v232_v37, %v230_v36  ;;  %v229_v40 = vld [vmem:[#allocation5 + $0xc0] sm:$0xff]  ;;  %v231_v41 = vld [vmem:[#allocation5 + $0xd0] sm:$0xff]  ;;  %v234_v42 = vld [vmem:[#allocation5 + $0xe8] sm:$0xff]  ;;  %p628_p5 = por %p627_p8, %p626_p3 }
  0x61   : > { %v236_v43 = vld [vmem:[#allocation5 + $0xf8] sm:$0xff]  ;;  %v472_v44 = vpack.c.bf16 %v231_v41, %v229_v40  ;;  %v233_v46 = vld [vmem:[#allocation5 + $0xe0] sm:$0xff]  ;;  %v235_v47 = vld [vmem:[#allocation5 + $0xf0] sm:$0xff] }
  0x62   : > { %v474_v45 = vpack.c.bf16 %v236_v43, %v234_v42  ;;  %v476_v48 = vpack.c.bf16 %v235_v47, %v233_v46  ;;  %v203_v49 = vld [vmem:[%s861_s20] sm:$0xff]  ;;  %v204_v50 = vld [vmem:[%s861_s20 + $0x8] sm:$0xff]  ;;  %p629_p11 = pnand %p628_p5, %p622_p1 }
  0x63   : > { %457 = vmatpush1.bf16.msra.mxu0 %v456_v20  ;;  %488 = vmatpush1.bf16.msra.mxu1 %v456_v20  ;;  %v237_v54 = vld [vmem:[%s926_s2] sm:$0x3] }
  0x64   : > { %459 = vmatprep.subr.bf16.mxu0 %v458_v21  ;;  %481 = vmatprep.subr.bf16.mxu1 %v458_v21  ;;  %v242_v56 = vrot.slane %v237_v54, %v241_v53  ;;  %v246_v57 = vrot.slane %v237_v54, %v245_v55 }
  0x67   : > { %461 = vmatpush1.bf16.msra.mxu0 %v460_v26  ;;  %489 = vmatpush1.bf16.msra.mxu1 %v460_v26 }
  0x68   : > { %463 = vmatprep.subr.bf16.mxu0 %v462_v27  ;;  %482 = vmatprep.subr.bf16.mxu1 %v462_v27 }
  0x6b   : > { %465 = vmatpush1.bf16.msra.mxu0 %v464_v32  ;;  %490 = vmatpush1.bf16.msra.mxu1 %v464_v32 }
  0x6c   : > { %467 = vmatprep.subr.bf16.mxu0 %v466_v33  ;;  %483 = vmatprep.subr.bf16.mxu1 %v466_v33 }
  0x6f   : > { %469 = vmatpush1.bf16.msra.mxu0 %v468_v38  ;;  %491 = vmatpush1.bf16.msra.mxu1 %v468_v38 }
  0x70   : > { %471 = vmatprep.subr.bf16.mxu0 %v470_v39  ;;  %484 = vmatprep.subr.bf16.mxu1 %v470_v39 }
  0x73   : > { %473 = vmatpush1.bf16.msra.mxu0 %v472_v44  ;;  %492 = vmatpush1.bf16.msra.mxu1 %v472_v44 }
  0x74   : > { %475 = vmatprep.subr.bf16.mxu0 %v474_v45  ;;  %485 = vmatprep.subr.bf16.mxu1 %v474_v45 }
  0x77   : > { %477 = vmatpush1.bf16.msra.mxu0 %v476_v48  ;;  %493 = vmatpush1.bf16.msra.mxu1 %v476_v48 }
  0x7a   : > { %314 = vmatmul.mubr.f32.vlgmr.msra.gmra.mrb[0].mxu0 %v203_v49  ;;  %320 = vmatmul.mubr.f32.vlgmr.msra.gmra.mrb[0].mxu1 %v204_v50 }
 0x14d   : > { %v315_v58 = vpop.f32.mrb[0].mxu0  ;;  %v321_v59 = vpop.f32.mrb[0].mxu1 }
 0x14e   : > { %v316_v60 = vadd.f32 %v315_v58, %v242_v56  ;;  %v322_v61 = vadd.f32 %v321_v59, %v242_v56  ;;  %v317_v62 = vpop.f32.mrb[1].mxu0  ;;  %v323_v63 = vpop.f32.mrb[1].mxu1 }
 0x14f   : > { %v318_v0 = vadd.f32 %v317_v62, %v246_v57  ;;  %v324_v1 = vadd.f32 %v323_v63, %v246_v57 }
 0x150   : > { %v326_v2 = vsub.f32 %v316_v60, %v322_v61 }
 0x151   : > { %v333_v3 = vsub.f32 %v318_v0, %v324_v1 }
 0x152   : > { %v441_v4 = vmul.f32 -1.442695, %v326_v2 }
 0x154   : > { %557 = vpow2.f32 %v441_v4 }
 0x15e   : > { %v558_v5 = vpop.eup %557 }
 0x15f   : > { %v330_v6 = vadd.f32 1.0, %v558_v5 }
 0x161   : > { %559 = vrcp.f32 %v330_v6 }
 0x16b   : > { %v560_v7 = vpop.eup %559 }
 0x16c   : > { %v334_v8 = vmul.f32 %v560_v7, %v333_v3 }
 0x16e   : > { %v335_v9 = vadd.f32 %v334_v8, %v324_v1 }
 0x170   : > { %336 = vst [vmem:[%s202_s22] sm:$0xff] %v335_v9 }
 0x171   : > { %632 = shalt.err (!%p629_p11)
}
 0x172   : > { %s633_s10 = scalar_lea.hbm %s881_s5, 128  ;;  %s637_s19 = scalar_lea.hbm %s927_s3, 512 }
 0x173   : > { %p634_p13 = scmp.ne.s32.totalorder %s881_s5, %s633_s10  ;;  %p638_p12 = scmp.lt.u32.totalorder %s881_s5, %s927_s3 }
 0x174   : > { %p639_p4 = scmp.lt.u32.totalorder %s637_s19, %s633_s10  ;;  %p641_p7 = scmp.lt.u32.totalorder %s633_s10, %s881_s5 }
 0x175   : > { %p635_p2 = pnand %p634_p13, %p945_p9 }
 0x176   : > { %p640_p0 = por %p639_p4, %p638_p12 }
 0x177   : > { %p636_p6 = pneg %p635_p2 }
 0x178   : > { %p642_p10 = por %p641_p7, %p640_p0 }
 0x17a   : > { %p643_p1 = pnand %p642_p10, %p636_p6 }
 0x17c   : > { %646 = shalt.err (!%p643_p1)
}
 0x17d   : > { %500 = dma.vmem_to_hbm [thread:$0]  (%p945_p9), %s883_s29, 128, %s881_s5, %s338_s6  }
 0x17e PF: > { %p517_p3 = scmp.ge.s32.totalorder %s689_s15, 2  ;;  %s363_s26 = sand.u32 1, %s677_s12  }
 0x17f   : > { %p946_p8 = scmp.ne.s32.totalorder %s935_s25, 0  ;;  %s364_s4 = scalar_lea.sflag [#allocation4], %s363_s26 }
 0x181   : > { %p511_p5 = pnand %p517_p3, %p946_p8 }
 0x183   : > { %672 = dma.done.wait (!%p511_p5), %s364_s4, 128  }
 0x184   : > { %674 = vsyncadd (!%p511_p5), %s364_s4, 4294967168  ;;  %p17_p11 = scmp.ge.s32.totalorder %s745_s18, 6   ;;  %s947_s12 = smov %s681_s13 }
 0x185   : > { %s948_s13 = smov %s685_s14  ;;  %s949_s14 = smov %s757_s21 }
 0x186   : > { %s950_s15 = smov %s745_s18  ;;  %19 = sbr.rel (!%p17_p11) target bundleno = 6 (0x6), region = 81 }
 0x18d   :  { %369 = vsyncpa [#allocation3], 1 }
 0x18e   :  { %371 = vsyncpa [#allocation3 + $0x1], 1 }
 0x18f   :  { %372 = vsyncpa [#allocation6], 1 }
 0x190   :  { %373 = vsyncpa [#allocation4], 1 }
 0x191   :  { %375 = vsyncpa [#allocation4 + $0x1], 1 }

</bundles_post_ra>
